<compile_context>
chip_gen: v6e
topology: v6e:2x2x1
jax: 0.10.0
libtpu: 0.0.40
codegen_flags: <defaults>
</compile_context>

<pallas_src>
import functools
import math

import jax
import jax.numpy as jnp
from jax import lax
from jax.experimental import pallas as pl
from jax.experimental.pallas import tpu as pltpu

# TODO(synk): the `LIF` activation class is not provided; we assume the
# standard spikingjelly multi-step LIF forward: tau=2.0, v_threshold=1.0,
# hard reset to v_reset=0, membrane state reset at the start of the forward.
TAU = 2.0
INV_TAU = 1.0 / TAU
V_TH = 1.0
BN_EPS = 1e-5

_SQUEEZED = pl.Squeezed() if hasattr(pl, "Squeezed") else None


def _vmem_budget_bytes():
    """Per-generation scoped-VMEM budget with headroom (v7x has only 64 MiB)."""
    cap = 64 * 1024 * 1024
    try:
        info = pltpu.get_tpu_info()
        cap = int(getattr(info, "vmem_capacity_bytes", cap))
    except Exception:
        pass
    return min(int(cap * 0.75), 96 * 1024 * 1024)


def _lif_step(v, x):
    """One LIF timestep in f32. Returns (new_v, spike). spike is f32 {0,1}."""
    v = v + (x - v) * INV_TAU
    spike = (v >= V_TH).astype(jnp.float32)
    v = v * (1.0 - spike)  # hard reset to 0
    return v, spike


def _row_tile(rows, cap=512):
    """Largest multiple-of-8 divisor of `rows` <= cap (or full rows)."""
    if rows <= cap or rows % 8 != 0:
        return rows
    best, d = 8, 8
    while d <= cap:
        if rows % d == 0:
            best = d
        d += 8
    return best


def _lane_tile(n, cap=4096):
    """Largest multiple-of-128 divisor of `n` <= cap (or full n)."""
    # TODO(synk): add a padded remainder path for large n not divisible by 128
    # (currently falls back to a single full block).
    if n <= cap or n % 128 != 0:
        return n
    best, d = 128, 128
    while d <= cap:
        if n % d == 0:
            best = d
        d += 128
    return best


# --------------------------------------------------------------------------
# Kernel 1: multi-step LIF over time (activation_in).
# Elementwise per neuron (sequential only over T): tensor flattened to a
# lane-dense (T, rows, 128) layout, tiled over rows for DMA efficiency.
# Inside the block, a fori_loop walks small sublane chunks so the carried
# membrane state is only a couple of vregs, with the static T loop innermost.
# --------------------------------------------------------------------------
def lif_kernel(x_ref, o_ref, *, chunk):
    T = x_ref.shape[0]
    lanes = x_ref.shape[2]
    n_chunks = x_ref.shape[1] // chunk

    def body(i, carry):
        r0 = pl.multiple_of(i * chunk, chunk)
        v = jnp.zeros((chunk, lanes), jnp.float32)
        for t in range(T):  # static unroll: LIF state is sequential over T
            v, s = _lif_step(v, x_ref[t, pl.ds(r0, chunk), :])
            o_ref[t, pl.ds(r0, chunk), :] = s.astype(o_ref.dtype)
        return carry

    lax.fori_loop(0, n_chunks, body, 0)


def lif_multistep(x_flat, budget):
    """x_flat: (T, N) f32 -> (T, N) bf16 spikes."""
    T, N = x_flat.shape
    if N % 128 == 0:
        rows, lanes = N // 128, 128
    else:
        rows, lanes = 1, N  # fall back to a full block (small-shape path)
    # rows cap from VMEM: double-buffered f32 input + bf16 output blocks.
    per_row = T * lanes * (4 + 2) * 2
    cap = max(8, min(1024, (budget // 4) // max(per_row, 1)))
    cap -= cap % 8
    cap = max(cap, 8)
    rtile = _row_tile(rows, cap)
    chunk = rtile
    for c in (32, 16, 8):
        if rtile % c == 0:
            chunk = c
            break
    x3 = x_flat.reshape(T, rows, lanes)
    out = pl.pallas_call(
        functools.partial(lif_kernel, chunk=chunk),
        out_shape=jax.ShapeDtypeStruct((T, rows, lanes), jnp.bfloat16),
        grid=(rows // rtile,),
        in_specs=[pl.BlockSpec((T, rtile, lanes), lambda i: (0, i, 0))],
        out_specs=pl.BlockSpec((T, rtile, lanes), lambda i: (0, i, 0)),
        compiler_params=pltpu.CompilerParams(
            dimension_semantics=("parallel",),
            vmem_limit_bytes=budget),
    )(x3)
    return out.reshape(T, N)


# --------------------------------------------------------------------------
# Kernel 2: patch conv `self.W` + eval-mode BN (+ folded scale1/scale2), as ONE
# weight-stationary, lane-dense matmul:
#   y(2C, L) = A(2C, K) @ patches(K, L) + b,  L = B*T*Np.
# A and b keep a constant block index => stay resident in VMEM across steps.
# --------------------------------------------------------------------------
def conv_bn_kernel(p_ref, a_ref, b_ref, o_ref):
    acc = jnp.dot(a_ref[...], p_ref[...], preferred_element_type=jnp.float32)
    o_ref[...] = (acc + b_ref[...]).astype(o_ref.dtype)


def conv_bn_matmul(patches, a, bias, budget):
    K, L = patches.shape
    OC = a.shape[0]
    # lane_tile so weight + double-buffered input/output tiles fit ~half budget.
    fixed = OC * K * 2 + OC * 128 * 4
    per_lane = 2 * (K + OC) * 2
    cap = max(128, min(4096, (budget // 2 - fixed) // max(per_lane, 1)))
    lane_tile = _lane_tile(L, cap)
    return pl.pallas_call(
        conv_bn_kernel,
        out_shape=jax.ShapeDtypeStruct((OC, L), jnp.bfloat16),
        grid=(L // lane_tile,),
        in_specs=[pl.BlockSpec((K, lane_tile), lambda i: (0, i)),
                  pl.BlockSpec((OC, K), lambda i: (0, 0)),
                  pl.BlockSpec((OC, 1), lambda i: (0, 0))],
        out_specs=pl.BlockSpec((OC, lane_tile), lambda i: (0, i)),
        compiler_params=pltpu.CompilerParams(
            dimension_semantics=("parallel",),
            vmem_limit_bytes=budget),
    )(patches, a, bias)


# --------------------------------------------------------------------------
# Kernel 3 (fused): per (batch, HW-tile) —
#   for each head (head-outer, time-inner; one head's LIF state live at a time):
#       attn_spk = LIF( y1^T @ x_spk )        (scale1 pre-folded into y1)
#       out_spk  = LIF( y2 @ attn_spk )       (scale2 pre-folded into y2)
#       out_spk written into a VMEM spike scratch at rows [h*Ch:(h+1)*Ch]
#   then Wproj (1x1 conv, BN folded) as one K=C matmul per timestep + residual.
# --------------------------------------------------------------------------
def attn_proj_kernel(y_ref, x_ref, wp_ref, bp_ref, r_ref, o_ref, spk_ref,
                     *, num_heads):
    T, C, HWt = x_ref.shape
    Np = y_ref.shape[2]
    Ch = C // num_heads

    for h in range(num_heads):           # static; state dies at end of each head
        base = 2 * Ch * h
        v_attn = jnp.zeros((Np, HWt), jnp.float32)
        v_out = jnp.zeros((Ch, HWt), jnp.float32)
        for t in range(T):                # static unroll (sequential LIF state)
            y1 = y_ref[base:base + Ch, t, :]             # (Ch, Np) bf16, scale1 folded
            y2 = y_ref[base + Ch:base + 2 * Ch, t, :]    # (Ch, Np) bf16, scale2 folded
            x_h = x_ref[t, h * Ch:(h + 1) * Ch, :]       # (Ch, HWt) bf16 spikes
            # attn = y1^T @ x_h -> (Np, HWt); contract over Ch, no transpose.
            attn = lax.dot_general(
                y1, x_h, (((0,), (0,)), ((), ())),
                preferred_element_type=jnp.float32)
            v_attn, a_spk = _lif_step(v_attn, attn)
            # out_h = y2 @ attn_spk -> (Ch, HWt)
            out_h = jnp.dot(y2, a_spk.astype(jnp.bfloat16),
                            preferred_element_type=jnp.float32)
            v_out, o_spk = _lif_step(v_out, out_h)
            spk_ref[t, h * Ch:(h + 1) * Ch, :] = o_spk.astype(jnp.bfloat16)

    # Wproj (BN folded) + bias + residual; single K=C matmul per timestep.
    wp = wp_ref[...]                      # (C, C) bf16
    bp = bp_ref[...]                      # (C, 1) f32
    for t in range(T):
        proj = jnp.dot(wp, spk_ref[t], preferred_element_type=jnp.float32)
        o_ref[t] = proj + bp + r_ref[t]


def dssa_attn_proj(y, x_spk, wproj, bproj, res, num_heads, budget):
    # y: (2C, B, T, Np) bf16 ; x_spk (bf16) / res (f32): (T, B, C, HW)
    twoC, B, T, Np = y.shape
    C, HW = x_spk.shape[2], x_spk.shape[3]
    Ch = C // num_heads

    # HW tile cap: VMEM footprint per lane column + keep per-head LIF state small.
    per_col = T * C * (2 * 2 + 2 * 4 + 2 * 4 + 2)   # x, res, out (dbl-buffered) + spike scratch
    fixed = 2 * twoC * T * max(Np, 128) * 2 + C * C * 2 + C * 128 * 4
    vmem_cap = (budget - fixed) // max(per_col, 1)
    vreg_cap = (128 * 1024) // (4 * (Np + Ch))      # ~half the vreg file per head
    cap = max(128, min(vmem_cap, vreg_cap, 2048))
    hw_tile = _lane_tile(HW, cap)

    kernel = functools.partial(attn_proj_kernel, num_heads=num_heads)
    return pl.pallas_call(
        kernel,
        out_shape=jax.ShapeDtypeStruct((T, B, C, HW), jnp.float32),
        grid=(B, HW // hw_tile),
        in_specs=[
            # y is constant across the hw axis -> stays resident in VMEM.
            pl.BlockSpec((twoC, _SQUEEZED, T, Np), lambda b, j: (0, b, 0, 0)),
            pl.BlockSpec((T, _SQUEEZED, C, hw_tile), lambda b, j: (0, b, 0, j)),
            pl.BlockSpec((C, C), lambda b, j: (0, 0)),
            pl.BlockSpec((C, 1), lambda b, j: (0, 0)),
            pl.BlockSpec((T, _SQUEEZED, C, hw_tile), lambda b, j: (0, b, 0, j)),
        ],
        out_specs=pl.BlockSpec((T, _SQUEEZED, C, hw_tile),
                               lambda b, j: (0, b, 0, j)),
        scratch_shapes=[pltpu.VMEM((T, C, hw_tile), jnp.bfloat16)],
        compiler_params=pltpu.CompilerParams(
            dimension_semantics=("parallel", "parallel"),
            vmem_limit_bytes=budget),
    )(y, x_spk, wproj, bproj, res)


# --------------------------------------------------------------------------
# DSSA forward (glue in plain JAX, hot paths in the Pallas kernels above).
# --------------------------------------------------------------------------
def dssa_forward(x, params, num_heads, patch_size, lenth):
    T, B, C, H, W = x.shape
    HW = H * W
    Hp, Wp = H // patch_size, W // patch_size
    Np = Hp * Wp
    Ch = C // num_heads
    K = C * patch_size * patch_size
    budget = _vmem_budget_bytes()

    # activation_in: multi-step LIF (elementwise; lane-dense flattening).
    x_spk_flat = lif_multistep(x.reshape(T, B * C * HW), budget)   # (T, N) bf16
    x_spk = x_spk_flat.reshape(T, B, C, HW)                        # free view

    # Patch extraction into (K, B*T*Np), whose matmul output (2C, B, T, Np)
    # is sliced directly by the attention kernel's index_maps.
    # TODO(synk): fold this relayout into the LIF kernel (second, patch-ordered
    # output written from VMEM) to remove one extra HBM pass over the spikes.
    patches = (x_spk.reshape(T, B, C, Hp, patch_size, Wp, patch_size)
               .transpose(2, 4, 6, 1, 0, 3, 5)
               .reshape(K, B * T * Np))                            # bf16

    # Per-head scales (eval mode: firing-rate buffers are fixed constants),
    # FOLDED into the conv+BN affine per output channel:
    #   rows [h*2Ch : h*2Ch+Ch]   (y1 of head h) *= scale1[h]
    #   rows [h*2Ch+Ch : (h+1)*2Ch] (y2 of head h) *= scale2[h]
    scale1 = 1.0 / jnp.sqrt(params['fr_x'] * float(Ch))
    scale2 = 1.0 / jnp.sqrt(params['fr_attn'] * float(lenth))
    row_scale = jnp.concatenate(
        [jnp.repeat(scale1[:, None], Ch, axis=1),
         jnp.repeat(scale2[:, None], Ch, axis=1)], axis=1).reshape(2 * C)

    # self.W + self.norm (BN folded into an affine on the conv) + row scales.
    g, be, mu, var = params['bn_w']
    inv_std = 1.0 / jnp.sqrt(var + BN_EPS)
    w_flat = params['w_conv'].reshape(2 * C, K)
    a_fold = (w_flat * (g * inv_std * row_scale)[:, None]).astype(jnp.bfloat16)
    b_fold = (((be - g * mu * inv_std) * row_scale)[:, None]).astype(jnp.float32)
    y = conv_bn_matmul(patches, a_fold, b_fold, budget)
    y = y.reshape(2 * C, B, T, Np)                                 # free view

    # Wproj (1x1 conv, no bias assumed) + norm_proj (BN folded).
    gp, bep, mup, varp = params['bn_proj']
    inv_std_p = 1.0 / jnp.sqrt(varp + BN_EPS)
    wp_fold = (params['w_proj'] * (gp * inv_std_p)[:, None]).astype(jnp.bfloat16)
    bp_fold = ((bep - gp * mup * inv_std_p)[:, None]).astype(jnp.float32)

    res = x.reshape(T, B, C, HW).astype(jnp.float32)               # residual

    out = dssa_attn_proj(y, x_spk, wp_fold, bp_fold, res, num_heads, budget)
    return out.reshape(T, B, C, H, W)


def make_params(key, dim, num_heads, patch_size):
    ks = jax.random.split(key, 12)
    w_conv = jax.random.normal(ks[0], (2 * dim, dim, patch_size, patch_size),
                               jnp.float32) / math.sqrt(dim * patch_size * patch_size)
    bn_w = (1.0 + 0.1 * jax.random.normal(ks[1], (2 * dim,), jnp.float32),
            0.1 * jax.random.normal(ks[2], (2 * dim,), jnp.float32),
            0.1 * jax.random.normal(ks[3], (2 * dim,), jnp.float32),
            0.5 + jnp.abs(jax.random.normal(ks[4], (2 * dim,), jnp.float32)))
    w_proj = jax.random.normal(ks[5], (dim, dim), jnp.float32) / math.sqrt(dim)
    bn_proj = (1.0 + 0.1 * jax.random.normal(ks[6], (dim,), jnp.float32),
               0.1 * jax.random.normal(ks[7], (dim,), jnp.float32),
               0.1 * jax.random.normal(ks[8], (dim,), jnp.float32),
               0.5 + jnp.abs(jax.random.normal(ks[9], (dim,), jnp.float32)))
    # TODO(synk): firing-rate buffers are zero at PyTorch __init__ (=> inf scale
    # in eval mode); use synthetic positive values as a trained model would have.
    fr_x = 0.1 + 0.2 * jax.random.uniform(ks[10], (num_heads,), jnp.float32)
    fr_attn = 0.1 + 0.2 * jax.random.uniform(ks[11], (num_heads,), jnp.float32)
    return dict(w_conv=w_conv, bn_w=bn_w, w_proj=w_proj, bn_proj=bn_proj,
                fr_x=fr_x, fr_attn=fr_attn)


if __name__ == "__main__":
    T, B, dim, num_heads = 2, 2, 16, 2
    H = W = 8
    patch_size = 4
    lenth = (H // patch_size) * (W // patch_size)  # number of patches

    key = jax.random.PRNGKey(0)
    k_par, k_x = jax.random.split(key)
    params = make_params(k_par, dim, num_heads, patch_size)
    x = jax.random.normal(k_x, (T, B, dim, H, W), jnp.float32) + 0.5

    out = dssa_forward(x, params, num_heads, patch_size, lenth)
    out = jax.block_until_ready(out)
    assert out.shape == (T, B, dim, H, W)
    assert bool(jnp.all(jnp.isfinite(out)))
    print("KERNEL_OK")
</pallas_src>

<mosaic_0001>
module attributes {stable_mosaic.version = 11 : i64} {
  func.func @lif_kernel(%arg0: i32, %arg1: memref<2x16x128xf32, #tpu.memory_space<vmem>>, %arg2: memref<2x16x128xbf16, #tpu.memory_space<vmem>>) attributes {dimension_semantics = [#tpu.dimension_semantics<parallel>], iteration_bounds = array<i64: 1>, scalar_prefetch = 0 : i64, scratch_operands = 0 : i64, tpu.core_type = #tpu.core_type<tc>, window_params = [{transform_indices = @transform_0, window_bounds = array<i64: 2, 16, 128>}, {transform_indices = @transform_1, window_bounds = array<i64: 2, 16, 128>}]} {
    %c0_i32 = arith.constant 0 : i32
    %c16_i32 = arith.constant 16 : i32
    %0 = arith.muli %c0_i32, %c16_i32 : i32
    %1 = tpu.assume_multiple %0, 16 : i32
    %cst = arith.constant 0.000000e+00 : f32
    %2 = vector.broadcast %cst : f32 to vector<16x128xf32>
    %c0 = arith.constant 0 : index
    %3 = arith.index_cast %1 : i32 to index
    %c0_0 = arith.constant 0 : index
    %4 = vector.load %arg1[%c0, %3, %c0_0] : memref<2x16x128xf32, #tpu.memory_space<vmem>>, vector<1x16x128xf32>
    %5 = vector.shape_cast %4 : vector<1x16x128xf32> to vector<16x128xf32>
    %6 = arith.subf %5, %2 : vector<16x128xf32>
    %cst_1 = arith.constant 5.000000e-01 : f32
    %7 = vector.broadcast %cst_1 : f32 to vector<16x128xf32>
    %8 = arith.mulf %6, %7 : vector<16x128xf32>
    %9 = arith.addf %2, %8 : vector<16x128xf32>
    %cst_2 = arith.constant 1.000000e+00 : f32
    %10 = vector.broadcast %cst_2 : f32 to vector<16x128xf32>
    %11 = arith.cmpf oge, %9, %10 : vector<16x128xf32>
    %12 = arith.extui %11 : vector<16x128xi1> to vector<16x128xi32>
    %13 = arith.sitofp %12 : vector<16x128xi32> to vector<16x128xf32>
    %cst_3 = arith.constant 1.000000e+00 : f32
    %14 = vector.broadcast %cst_3 : f32 to vector<16x128xf32>
    %15 = arith.subf %14, %13 : vector<16x128xf32>
    %16 = arith.mulf %9, %15 : vector<16x128xf32>
    %17 = arith.truncf %13 : vector<16x128xf32> to vector<16x128xbf16>
    %c0_4 = arith.constant 0 : index
    %18 = arith.index_cast %1 : i32 to index
    %c0_5 = arith.constant 0 : index
    %19 = vector.load %arg2[%c0_4, %18, %c0_5] : memref<2x16x128xbf16, #tpu.memory_space<vmem>>, vector<1x16x128xbf16>
    %20 = vector.shape_cast %19 : vector<1x16x128xbf16> to vector<16x128xbf16>
    %21 = vector.shape_cast %17 : vector<16x128xbf16> to vector<1x16x128xbf16>
    tpu.vector_store %arg2[%c0_4, %18, %c0_5], %21 {strides = array<i32>} : memref<2x16x128xbf16, #tpu.memory_space<vmem>>, vector<1x16x128xbf16>,
    %c1 = arith.constant 1 : index
    %22 = arith.index_cast %1 : i32 to index
    %c0_6 = arith.constant 0 : index
    %23 = vector.load %arg1[%c1, %22, %c0_6] : memref<2x16x128xf32, #tpu.memory_space<vmem>>, vector<1x16x128xf32>
    %24 = vector.shape_cast %23 : vector<1x16x128xf32> to vector<16x128xf32>
    %25 = arith.subf %24, %16 : vector<16x128xf32>
    %cst_7 = arith.constant 5.000000e-01 : f32
    %26 = vector.broadcast %cst_7 : f32 to vector<16x128xf32>
    %27 = arith.mulf %25, %26 : vector<16x128xf32>
    %28 = arith.addf %16, %27 : vector<16x128xf32>
    %cst_8 = arith.constant 1.000000e+00 : f32
    %29 = vector.broadcast %cst_8 : f32 to vector<16x128xf32>
    %30 = arith.cmpf oge, %28, %29 : vector<16x128xf32>
    %31 = arith.extui %30 : vector<16x128xi1> to vector<16x128xi32>
    %32 = arith.sitofp %31 : vector<16x128xi32> to vector<16x128xf32>
    %33 = arith.truncf %32 : vector<16x128xf32> to vector<16x128xbf16>
    %c1_9 = arith.constant 1 : index
    %34 = arith.index_cast %1 : i32 to index
    %c0_10 = arith.constant 0 : index
    %35 = vector.load %arg2[%c1_9, %34, %c0_10] : memref<2x16x128xbf16, #tpu.memory_space<vmem>>, vector<1x16x128xbf16>
    %36 = vector.shape_cast %35 : vector<1x16x128xbf16> to vector<16x128xbf16>
    %37 = vector.shape_cast %33 : vector<16x128xbf16> to vector<1x16x128xbf16>
    tpu.vector_store %arg2[%c1_9, %34, %c0_10], %37 {strides = array<i32>} : memref<2x16x128xbf16, #tpu.memory_space<vmem>>, vector<1x16x128xbf16>,
    %c1_i32 = arith.constant 1 : i32
    return
  }
  func.func @transform_0(%arg0: i32) -> (i32, i32, i32) {
    %c0_i32 = arith.constant 0 : i32
    %c0_i32_0 = arith.constant 0 : i32
    %c0_i32_1 = arith.constant 0 : i32
    return %c0_i32, %arg0, %c0_i32_0 : i32, i32, i32
  }
  func.func @transform_1(%arg0: i32) -> (i32, i32, i32) {
    %c0_i32 = arith.constant 0 : i32
    %c0_i32_0 = arith.constant 0 : i32
    %c0_i32_1 = arith.constant 0 : i32
    return %c0_i32, %arg0, %c0_i32_0 : i32, i32, i32
  }
}

</mosaic_0001>

<bundles_post_ra>
// kernel: tpu_custom_call.1
= control target key start
LH: loop header
LB: loop body
LE: loop exit
PB: predicated region body
PF: predicated region fallthrough
CT: control target
= control target key end

     0   :  { %6 = vsyncpa [#allocation3], 0  ;;  %s189_s0 = inlined_call_operand.hbm [shape: f32[2,16,128], index: 0, kind: input, shape index: {}]   ;;  %s190_s1 = inlined_call_operand.hbm [shape: bf16[2,16,128], index: 1, kind: output, shape index: {}]  }
   0x1   :  { %7 = vsyncpa [#allocation4], 0  ;;  %s166_s6 = smov [#allocation2]  }
   0x2   :  { %s13_s7 = sshll.u32 %s166_s6, 4  ;;  %s14_s7 = int_to_ptr.vmem [resolvable:$true] %s13_s7 }
   0x3   :  { %s130_s8 = scalar_lea.vmem %s14_s7, 512  ;;  %p135_p1 = scmp.lt.s32.totalorder %s14_s7, %s14_s7 }
   0x4   :  { %p131_p0 = scmp.ne.s32.totalorder %s14_s7, %s130_s8  ;;  %p136_p2 = scmp.lt.s32.totalorder %s130_s8, %s130_s8 }
   0x6   :  { %p137_p3 = por %p136_p2, %p135_p1 }
   0x8   :  { %p138_p4 = pnand %p137_p3, %p131_p0 }
   0xa   :  { %141 = shalt.err (!%p138_p4)
}
   0xb   :  { %s167_s9 = smov 128   ;;  %s168_s10 = smov 8  }
   0xc   :  { %19 = dma.hbm_to_vmem [thread:$0]  %s189_s0, 512, %s14_s7, [#allocation3], %s167_s9, %s167_s9, %s168_s10  }
   0xd   :  { %162 = dma.done.wait [#allocation3], 512  }
   0xe   :  { %163 = vsyncadd [#allocation3], 4294966784  ;;  %v23_v0 = vld [vmem:[#allocation2] sm:$0xff]  ;;  %v24_v1 = vld [vmem:[#allocation2 + $0x8] sm:$0xff]  ;;  %v169_v4 = vmov 0.0   ;;  %s170_s0 = smov [#allocation5]  }
   0xf   :  { %v25_v2 = vmul.f32 0.5, %v23_v0  ;;  %v26_v3 = vmul.f32 0.5, %v24_v1  ;;  %v51_v10 = vld [vmem:[#allocation2 + $0x10] sm:$0xff]  ;;  %v52_v11 = vld [vmem:[#allocation2 + $0x18] sm:$0xff]  ;;  %s83_s13 = sshll.u32 %s170_s0, 4  ;;  %s84_s13 = int_to_ptr.vmem [resolvable:$true] %s83_s13 }
  0x10   :  { %s142_s14 = scalar_lea.vmem %s84_s13, 256  ;;  %p147_p6 = scmp.lt.s32.totalorder %s84_s13, %s84_s13 }
  0x11   :  { %vm29_vm0 = vcmp.ge.f32.partialorder %v25_v2, 1.0  ;;  %vm30_vm1 = vcmp.ge.f32.partialorder %v26_v3, 1.0  ;;  %p143_p5 = scmp.ne.s32.totalorder %s84_s13, %s142_s14  ;;  %p148_p7 = scmp.lt.s32.totalorder %s142_s14, %s142_s14 }
  0x12   :  { %v97_v5 = vsel %vm29_vm0, 1.0, %v169_v4  ;;  %v98_v6 = vsel %vm30_vm1, 1.0, %v169_v4 }
  0x13   :  { %v35_v7 = vsub.f32 1.0, %v97_v5  ;;  %v36_v8 = vsub.f32 1.0, %v98_v6  ;;  %v110_v9 = vpack.c.bf16 %v98_v6, %v97_v5  ;;  %p149_p8 = por %p148_p7, %p147_p6 }
  0x15   :  { %v37_v12 = vmul.f32 %v35_v7, %v25_v2  ;;  %v38_v13 = vmul.f32 %v36_v8, %v26_v3  ;;  %111 = vst [vmem:[#allocation5] sm:$0xff] %v110_v9   ;;  %p150_p9 = pnand %p149_p8, %p143_p5 }
  0x17   :  { %v53_v14 = vsub.f32 %v51_v10, %v37_v12  ;;  %v54_v15 = vsub.f32 %v52_v11, %v38_v13 }
  0x19   :  { %v55_v16 = vmul.f32 0.5, %v53_v14  ;;  %v56_v17 = vmul.f32 0.5, %v54_v15 }
  0x1b   :  { %v57_v18 = vadd.f32 %v55_v16, %v37_v12  ;;  %v58_v19 = vadd.f32 %v56_v17, %v38_v13 }
  0x1d   :  { %vm59_vm2 = vcmp.ge.f32.partialorder %v57_v18, 1.0  ;;  %vm60_vm3 = vcmp.ge.f32.partialorder %v58_v19, 1.0 }
  0x1e   :  { %v101_v20 = vsel %vm59_vm2, 1.0, %v169_v4  ;;  %v102_v21 = vsel %vm60_vm3, 1.0, %v169_v4 }
  0x1f   :  { %v113_v22 = vpack.c.bf16 %v102_v21, %v101_v20 }
  0x21   :  { %114 = vst [vmem:[#allocation5 + $0x8] sm:$0xff] %v113_v22  }
  0x22   :  { %153 = shalt.err (!%p150_p9)
}
  0x23   :  { %s171_s15 = smov 64   ;;  %s172_s16 = smov 4  }
  0x24   :  { %89 = dma.vmem_to_hbm [thread:$0]  %s84_s13, 256, %s190_s1, [#allocation4], %s171_s15, %s171_s15, %s172_s16  }
  0x25   :  { %164 = dma.done.wait [#allocation4], 256  }
  0x26   :  { %165 = vsyncadd [#allocation4], 4294967040 }
  0x27   :  { %93 = vsyncpa [#allocation3], 1 }
  0x28   :  { %94 = vsyncpa [#allocation4], 1 }

</bundles_post_ra>
